<compile_context>
chip_gen: v5e
topology: v5e:2x2
jax: 0.10.0
libtpu: 0.0.40
codegen_flags: <defaults>
</compile_context>

<pallas_src>
import functools

import jax
import jax.numpy as jnp
from jax import lax
from jax.experimental import pallas as pl
from jax.experimental.pallas import tpu as pltpu


def pam_flash_kernel(x1q_ref, q_ref, k_ref, v_ref, gamma_ref, o_ref,
                     acc_ref, m_ref, l_ref, *, use_bf16_exp):
    """One grid step = (batch b, query tile qi, key/value tile ki); ki is innermost.

    Shapes inside the kernel (channel-major, N on lanes):
      x1q_ref : (1, C,  tq) f32   residual slab of x1
      q_ref   : (1, Cq, tq) bf16  precomputed query tile   (constant across ki)
      k_ref   : (1, Cq, tk) bf16  precomputed key tile
      v_ref   : (1, C,  tk) bf16  precomputed value tile
      gamma   : (1,) f32 in SMEM
      o_ref   : (1, C,  tq) out dtype
      scratch : acc (C, tq) f32, m/l (1, tq) f32
    """
    ki = pl.program_id(2)
    nk = pl.num_programs(2)

    # ---- init online-softmax state for a new (b, q-tile) ----
    @pl.when(ki == 0)
    def _():
        m_ref[...] = jnp.full_like(m_ref, -jnp.inf)
        l_ref[...] = jnp.zeros_like(l_ref)
        acc_ref[...] = jnp.zeros_like(acc_ref)

    q = q_ref[0]                                                   # (Cq, tq) bf16
    k = k_ref[0]                                                   # (Cq, tk) bf16
    v = v_ref[0]                                                   # (C,  tk) bf16

    # energy^T[j, i] = sum_c k[c, j] * q[c, i]; softmax over j (sublane axis).
    s_t = lax.dot_general(k, q, (((0,), (0,)), ((), ())),
                          preferred_element_type=jnp.float32)      # (tk, tq) f32

    # ---- online softmax update (m/l/acc in f32) ----
    m_prev = m_ref[...]                                            # (1, tq)
    m_new = jnp.maximum(m_prev, jnp.max(s_t, axis=0, keepdims=True))
    alpha = jnp.exp(m_prev - m_new)                                # (1, tq)
    if use_bf16_exp:
        # bf16 EUP path (v6e/v7x): exp in bf16, feed PV matmul directly.
        p = jnp.exp((s_t - m_new).astype(jnp.bfloat16))            # (tk, tq) bf16
        p_sum = jnp.sum(p.astype(jnp.float32), axis=0, keepdims=True)
    else:
        p_f32 = jnp.exp(s_t - m_new)                               # (tk, tq) f32
        p = p_f32.astype(jnp.bfloat16)
        p_sum = jnp.sum(p_f32, axis=0, keepdims=True)

    l_ref[...] = alpha * l_ref[...] + p_sum
    # acc[c, i] = alpha[i] * acc[c, i] + sum_j v[c, j] * p[j, i]  (plain NN matmul)
    acc_ref[...] = alpha * acc_ref[...] + jnp.dot(
        v, p, preferred_element_type=jnp.float32)                  # (C, tq)
    m_ref[...] = m_new

    # ---- finalize: exact normalize, gamma-scale, residual, lane-dense store ----
    @pl.when(ki == nk - 1)
    def _():
        inv_l = pl.reciprocal(l_ref[...], approx=False)            # exact, off critical path
        gamma = gamma_ref[0]                                       # scalar from SMEM
        out = gamma * (acc_ref[...] * inv_l) + x1q_ref[0]          # (C, tq) f32
        o_ref[0] = out.astype(o_ref.dtype)


def _pick_tile(n, preferred):
    """Largest tile <= preferred that is a multiple of 128 and divides n (or n itself)."""
    if n <= preferred:
        return n
    t = (preferred // 128) * 128
    while t >= 128:
        if n % t == 0:
            return t
        t -= 128
    return n


def _chip_defaults():
    """(tq_pref, tk_pref, use_bf16_exp) per TPU generation (perf review items 2/5/6/7)."""
    try:
        kind = jax.devices()[0].device_kind.lower()
    except Exception:
        kind = ""
    if "v5" in kind:
        return 256, 256, False      # near the v5e ridge already; no bf16 EUP
    if "v7" in kind:
        return 512, 512, True       # clears ~310 FLOP/byte ridge within 64 MiB VMEM
    if "v6" in kind:
        return 1024, 512, True      # ~650-700 FLOP/byte ridge, 128 MiB VMEM
    return 512, 512, False


def _vmem_limit_bytes(C, Cq, tq, tk):
    """Working-set estimate + headroom, never the full physical VMEM (review item 4)."""
    ws = 0
    ws += 2 * C * tq * 4            # x1 residual tiles (f32, double buffered)
    ws += 2 * Cq * tq * 2           # q tiles (bf16)
    ws += 2 * Cq * tk * 2           # k tiles (bf16)
    ws += 2 * C * tk * 2            # v tiles (bf16)
    ws += 2 * C * tq * 4            # output tiles (f32)
    ws += C * tq * 4 + 2 * tq * 4   # acc + m + l scratch
    ws += 3 * tk * tq * 4           # compiler-materialized s_t / p_t temporaries
    limit = int(1.5 * ws) + (4 << 20)
    return max(32 << 20, min(limit, 48 << 20))


def pam_forward(x1, x2, wq, bq, wk, bk, wv, bv, gamma, *, tq=None, tk=None,
                out_dtype=jnp.float32):
    """x1, x2: NCHW float32. Torch-native weight layout: wq/wk (Cq, C), wv (C, C),
    biases (Cq, 1)/(C, 1), gamma (1,). Returns NCHW `out_dtype` (f32 default; pass
    bf16 if the downstream decoder consumes bf16 -- review item 9)."""
    B, C, H, W = x1.shape
    N = H * W
    Cq = wq.shape[0]

    tq_pref, tk_pref, use_bf16_exp = _chip_defaults()
    auto_tq = tq is None
    if tq is None:
        tq = _pick_tile(N, tq_pref)
    if tk is None:
        tk = _pick_tile(N, tk_pref)
    # Megacore (v7x): keep the parallel extent B*(N//tq) >= 2 so both TCs get work.
    if auto_tq and B * (N // tq) < 2:
        half = _pick_tile(N, max(128, tq // 2))
        if half < tq:
            tq = half
    assert N % tq == 0 and N % tk == 0, "N must be divisible by the chosen tiles"

    # NCHW -> (B, C, N): a pure reshape, no HBM transpose round-trip.
    x1f = x1.reshape(B, C, N).astype(jnp.float32)
    x2f = x2.reshape(B, C, N).astype(jnp.float32)

    # Hoisted 1x1 projections (review item 1): computed once in f32, streamed as bf16.
    q_all = (jnp.einsum('oc,bcn->bon', wq, x1f) + bq).astype(jnp.bfloat16)   # (B, Cq, N)
    k_all = (jnp.einsum('oc,bcn->bon', wk, x2f) + bk).astype(jnp.bfloat16)   # (B, Cq, N)
    v_all = (jnp.einsum('oc,bcn->bon', wv, x1f) + bv).astype(jnp.bfloat16)   # (B, C,  N)
    gamma_s = gamma.reshape(1).astype(jnp.float32)

    grid = (B, N // tq, N // tk)
    kernel = functools.partial(pam_flash_kernel, use_bf16_exp=use_bf16_exp)

    out_flat = pl.pallas_call(
        kernel,
        out_shape=jax.ShapeDtypeStruct((B, C, N), out_dtype),
        grid=grid,
        in_specs=[
            pl.BlockSpec((1, C, tq), lambda b, qi, ki: (b, 0, qi)),    # x1 residual (f32)
            pl.BlockSpec((1, Cq, tq), lambda b, qi, ki: (b, 0, qi)),   # Q tile (bf16)
            pl.BlockSpec((1, Cq, tk), lambda b, qi, ki: (b, 0, ki)),   # K tile (bf16)
            pl.BlockSpec((1, C, tk), lambda b, qi, ki: (b, 0, ki)),    # V tile (bf16)
            pl.BlockSpec(memory_space=pltpu.MemorySpace.SMEM),         # gamma scalar
        ],
        out_specs=pl.BlockSpec((1, C, tq), lambda b, qi, ki: (b, 0, qi)),
        scratch_shapes=[
            pltpu.VMEM((C, tq), jnp.float32),   # acc
            pltpu.VMEM((1, tq), jnp.float32),   # running max m
            pltpu.VMEM((1, tq), jnp.float32),   # running sum l
        ],
        compiler_params=pltpu.CompilerParams(
            dimension_semantics=("parallel", "parallel", "arbitrary"),
            vmem_limit_bytes=_vmem_limit_bytes(C, Cq, tq, tk),
        ),
    )(x1f, q_all, k_all, v_all, gamma_s)

    return out_flat.reshape(B, C, H, W)


def pam_reference(x1, x2, wq, bq, wk, bk, wv, bv, gamma):
    """Pure-JAX f32 mirror of the PyTorch forward (for correctness check)."""
    B, C, H, W = x1.shape
    N = H * W
    x1f = x1.reshape(B, C, N)
    x2f = x2.reshape(B, C, N)
    q = jnp.einsum('oc,bcn->bon', wq, x1f) + bq            # (B, Cq, N)
    k = jnp.einsum('oc,bcn->bon', wk, x2f) + bk            # (B, Cq, N)
    v = jnp.einsum('oc,bcn->bon', wv, x1f) + bv            # (B, C, N)
    energy = jnp.einsum('bci,bcj->bij', q, k)              # (B, N, N)
    att = jax.nn.softmax(energy, axis=-1)
    out = jnp.einsum('bcj,bij->bci', v, att)               # (B, C, N)
    out = gamma[0] * out + x1f
    return out.reshape(B, C, H, W)


if __name__ == "__main__":
    # Small shapes consistent with the module; N=256 with tq=tk=128 exercises the
    # multi-tile online-softmax path (2 query tiles x 2 kv tiles per batch element).
    B, C, H, W = 2, 16, 16, 16
    Cq = C // 8

    key = jax.random.PRNGKey(0)
    k1, k2, k3, k4, k5, k6, k7, k8 = jax.random.split(key, 8)

    x1 = jax.random.normal(k1, (B, C, H, W), dtype=jnp.float32)
    x2 = jax.random.normal(k2, (B, C, H, W), dtype=jnp.float32)

    # 1x1 conv params in torch-native (out, in) layout.
    wq = 0.1 * jax.random.normal(k3, (Cq, C), dtype=jnp.float32)
    bq = 0.1 * jax.random.normal(k4, (Cq, 1), dtype=jnp.float32)
    wk = 0.1 * jax.random.normal(k5, (Cq, C), dtype=jnp.float32)
    bk = 0.1 * jax.random.normal(k6, (Cq, 1), dtype=jnp.float32)
    wv = 0.1 * jax.random.normal(k7, (C, C), dtype=jnp.float32)
    bv = 0.1 * jax.random.normal(k8, (C, 1), dtype=jnp.float32)
    # The module inits gamma = 0 (output would trivially equal x1); use a nonzero value
    # so the attention path is exercised.
    gamma = jnp.full((1,), 0.5, dtype=jnp.float32)

    out = pam_forward(x1, x2, wq, bq, wk, bk, wv, bv, gamma, tq=128, tk=128)
    out = jax.block_until_ready(out)

    ref = pam_reference(x1, x2, wq, bq, wk, bk, wv, bv, gamma)
    assert out.shape == (B, C, H, W)
    max_err = float(jnp.max(jnp.abs(out - ref)))
    # bf16 MXU operands / bf16 softmax probs (f32 accumulation) -> loosened tolerance.
    assert jnp.allclose(out, ref, atol=2e-2, rtol=2e-2), \
        f"Pallas kernel mismatch vs reference (max abs err {max_err})"
    print("KERNEL_OK")
</pallas_src>

<mosaic_0001>
module attributes {stable_mosaic.version = 11 : i64} {
  func.func @pam_flash_kernel(%arg0: i32, %arg1: i32, %arg2: i32, %arg3: memref<1x16x128xf32, #tpu.memory_space<vmem>>, %arg4: memref<1x2x128xbf16, #tpu.memory_space<vmem>>, %arg5: memref<1x2x128xbf16, #tpu.memory_space<vmem>>, %arg6: memref<1x16x128xbf16, #tpu.memory_space<vmem>>, %arg7: memref<1xf32, #tpu.memory_space<smem>>, %arg8: memref<1x16x128xf32, #tpu.memory_space<vmem>>, %arg9: memref<16x128xf32, #tpu.memory_space<vmem>>, %arg10: memref<1x128xf32, #tpu.memory_space<vmem>>, %arg11: memref<1x128xf32, #tpu.memory_space<vmem>>) attributes {dimension_semantics = [#tpu.dimension_semantics<parallel>, #tpu.dimension_semantics<parallel>, #tpu.dimension_semantics<arbitrary>], iteration_bounds = array<i64: 2, 2, 2>, scalar_prefetch = 0 : i64, scratch_operands = 3 : i64, tpu.core_type = #tpu.core_type<tc>, window_params = [{transform_indices = @transform_0, window_bounds = array<i64: 1, 16, 128>}, {transform_indices = @transform_1, window_bounds = array<i64: 1, 2, 128>}, {transform_indices = @transform_2, window_bounds = array<i64: 1, 2, 128>}, {transform_indices = @transform_3, window_bounds = array<i64: 1, 16, 128>}, {transform_indices = @transform_4, window_bounds = array<i64: 1>}, {transform_indices = @transform_5, window_bounds = array<i64: 1, 16, 128>}]} {
    %c0_i32 = arith.constant 0 : i32
    %0 = arith.cmpi eq, %arg2, %c0_i32 : i32
    %1 = arith.extui %0 : i1 to i32
    %c0_i32_0 = arith.constant 0 : i32
    %2 = arith.cmpi ne, %1, %c0_i32_0 : i32
    scf.if %2 {
      %cst_25 = arith.constant 0xFF800000 : f32
      %36 = vector.broadcast %cst_25 : f32 to vector<1x128xf32>
      %c0_26 = arith.constant 0 : index
      %c0_27 = arith.constant 0 : index
      %37 = vector.load %arg10[%c0_26, %c0_27] : memref<1x128xf32, #tpu.memory_space<vmem>>, vector<1x128xf32>
      tpu.vector_store %arg10[%c0_26, %c0_27], %36 {strides = array<i32>} : memref<1x128xf32, #tpu.memory_space<vmem>>, vector<1x128xf32>,
      %cst_28 = arith.constant 0.000000e+00 : f32
      %38 = vector.broadcast %cst_28 : f32 to vector<1x128xf32>
      %c0_29 = arith.constant 0 : index
      %c0_30 = arith.constant 0 : index
      %39 = vector.load %arg11[%c0_29, %c0_30] : memref<1x128xf32, #tpu.memory_space<vmem>>, vector<1x128xf32>
      tpu.vector_store %arg11[%c0_29, %c0_30], %38 {strides = array<i32>} : memref<1x128xf32, #tpu.memory_space<vmem>>, vector<1x128xf32>,
      %cst_31 = arith.constant 0.000000e+00 : f32
      %40 = vector.broadcast %cst_31 : f32 to vector<16x128xf32>
      %c0_32 = arith.constant 0 : index
      %c0_33 = arith.constant 0 : index
      %41 = vector.load %arg9[%c0_32, %c0_33] : memref<16x128xf32, #tpu.memory_space<vmem>>, vector<16x128xf32>
      tpu.vector_store %arg9[%c0_32, %c0_33], %40 {strides = array<i32>} : memref<16x128xf32, #tpu.memory_space<vmem>>, vector<16x128xf32>,
    } else {
    }
    %c0 = arith.constant 0 : index
    %c0_1 = arith.constant 0 : index
    %c0_2 = arith.constant 0 : index
    %3 = vector.load %arg4[%c0, %c0_1, %c0_2] : memref<1x2x128xbf16, #tpu.memory_space<vmem>>, vector<1x2x128xbf16>
    %4 = vector.shape_cast %3 : vector<1x2x128xbf16> to vector<2x128xbf16>
    %c0_3 = arith.constant 0 : index
    %c0_4 = arith.constant 0 : index
    %c0_5 = arith.constant 0 : index
    %5 = vector.load %arg5[%c0_3, %c0_4, %c0_5] : memref<1x2x128xbf16, #tpu.memory_space<vmem>>, vector<1x2x128xbf16>
    %6 = vector.shape_cast %5 : vector<1x2x128xbf16> to vector<2x128xbf16>
    %c0_6 = arith.constant 0 : index
    %c0_7 = arith.constant 0 : index
    %c0_8 = arith.constant 0 : index
    %7 = vector.load %arg6[%c0_6, %c0_7, %c0_8] : memref<1x16x128xbf16, #tpu.memory_space<vmem>>, vector<1x16x128xbf16>
    %8 = vector.shape_cast %7 : vector<1x16x128xbf16> to vector<16x128xbf16>
    %cst = arith.constant dense<0.000000e+00> : vector<128x128xf32>
    %9 = tpu.matmul %6, %4, %cst {dimension_numbers = #tpu.dot_dimension_numbers<[0], [0], [1], [1], [0, 1, 1, 1], [], []>} : vector<2x128xbf16>, vector<2x128xbf16>, vector<128x128xf32> -> vector<128x128xf32>
    %c0_9 = arith.constant 0 : index
    %c0_10 = arith.constant 0 : index
    %10 = vector.load %arg10[%c0_9, %c0_10] : memref<1x128xf32, #tpu.memory_space<vmem>>, vector<1x128xf32>
    %cst_11 = arith.constant dense<0xFF800000> : vector<128xf32>
    %11 = vector.multi_reduction <maximumf>, %9, %cst_11 [0] : vector<128x128xf32> to vector<128xf32>
    %12 = vector.shape_cast %11 : vector<128xf32> to vector<1x128xf32>
    %13 = arith.maximumf %10, %12 : vector<1x128xf32>
    %14 = arith.subf %10, %13 : vector<1x128xf32>
    %15 = math.exp %14 : vector<1x128xf32>
    %16 = vector.broadcast %13 : vector<1x128xf32> to vector<128x128xf32>
    %17 = arith.subf %9, %16 : vector<128x128xf32>
    %18 = math.exp %17 : vector<128x128xf32>
    %19 = arith.truncf %18 : vector<128x128xf32> to vector<128x128xbf16>
    %cst_12 = arith.constant dense<0.000000e+00> : vector<128xf32>
    %20 = vector.multi_reduction <add>, %18, %cst_12 [0] : vector<128x128xf32> to vector<128xf32>
    %21 = vector.shape_cast %20 : vector<128xf32> to vector<1x128xf32>
    %c0_13 = arith.constant 0 : index
    %c0_14 = arith.constant 0 : index
    %22 = vector.load %arg11[%c0_13, %c0_14] : memref<1x128xf32, #tpu.memory_space<vmem>>, vector<1x128xf32>
    %23 = arith.mulf %15, %22 : vector<1x128xf32>
    %24 = arith.addf %23, %21 : vector<1x128xf32>
    %c0_15 = arith.constant 0 : index
    %c0_16 = arith.constant 0 : index
    %25 = vector.load %arg11[%c0_15, %c0_16] : memref<1x128xf32, #tpu.memory_space<vmem>>, vector<1x128xf32>
    tpu.vector_store %arg11[%c0_15, %c0_16], %24 {strides = array<i32>} : memref<1x128xf32, #tpu.memory_space<vmem>>, vector<1x128xf32>,
    %c0_17 = arith.constant 0 : index
    %c0_18 = arith.constant 0 : index
    %26 = vector.load %arg9[%c0_17, %c0_18] : memref<16x128xf32, #tpu.memory_space<vmem>>, vector<16x128xf32>
    %27 = vector.broadcast %15 : vector<1x128xf32> to vector<16x128xf32>
    %28 = arith.mulf %27, %26 : vector<16x128xf32>
    %cst_19 = arith.constant dense<0.000000e+00> : vector<16x128xf32>
    %29 = tpu.matmul %8, %19, %cst_19 {dimension_numbers = #tpu.dot_dimension_numbers<[1], [0], [0], [1], [0, 0, 1, 1], [], []>} : vector<16x128xbf16>, vector<128x128xbf16>, vector<16x128xf32> -> vector<16x128xf32>
    %30 = arith.addf %28, %29 : vector<16x128xf32>
    %c0_20 = arith.constant 0 : index
    %c0_21 = arith.constant 0 : index
    %31 = vector.load %arg9[%c0_20, %c0_21] : memref<16x128xf32, #tpu.memory_space<vmem>>, vector<16x128xf32>
    tpu.vector_store %arg9[%c0_20, %c0_21], %30 {strides = array<i32>} : memref<16x128xf32, #tpu.memory_space<vmem>>, vector<16x128xf32>,
    %c0_22 = arith.constant 0 : index
    %c0_23 = arith.constant 0 : index
    %32 = vector.load %arg10[%c0_22, %c0_23] : memref<1x128xf32, #tpu.memory_space<vmem>>, vector<1x128xf32>
    tpu.vector_store %arg10[%c0_22, %c0_23], %13 {strides = array<i32>} : memref<1x128xf32, #tpu.memory_space<vmem>>, vector<1x128xf32>,
    %c1_i32 = arith.constant 1 : i32
    %33 = arith.cmpi eq, %arg2, %c1_i32 : i32
    %34 = arith.extui %33 : i1 to i32
    %c0_i32_24 = arith.constant 0 : i32
    %35 = arith.cmpi ne, %34, %c0_i32_24 : i32
    scf.if %35 {
      %c0_25 = arith.constant 0 : index
      %c0_26 = arith.constant 0 : index
      %36 = vector.load %arg11[%c0_25, %c0_26] : memref<1x128xf32, #tpu.memory_space<vmem>>, vector<1x128xf32>
      %37 = tpu.reciprocal %36 : vector<1x128xf32> -> vector<1x128xf32>
      %c0_27 = arith.constant 0 : index
      %38 = memref.load %arg7[%c0_27] : memref<1xf32, #tpu.memory_space<smem>>
      %c0_28 = arith.constant 0 : index
      %c0_29 = arith.constant 0 : index
      %39 = vector.load %arg9[%c0_28, %c0_29] : memref<16x128xf32, #tpu.memory_space<vmem>>, vector<16x128xf32>
      %40 = vector.broadcast %37 : vector<1x128xf32> to vector<16x128xf32>
      %41 = arith.mulf %39, %40 : vector<16x128xf32>
      %42 = vector.broadcast %38 : f32 to vector<16x128xf32>
      %43 = arith.mulf %42, %41 : vector<16x128xf32>
      %c0_30 = arith.constant 0 : index
      %c0_31 = arith.constant 0 : index
      %c0_32 = arith.constant 0 : index
      %44 = vector.load %arg3[%c0_30, %c0_31, %c0_32] : memref<1x16x128xf32, #tpu.memory_space<vmem>>, vector<1x16x128xf32>
      %45 = vector.shape_cast %44 : vector<1x16x128xf32> to vector<16x128xf32>
      %46 = arith.addf %43, %45 : vector<16x128xf32>
      %c0_33 = arith.constant 0 : index
      %c0_34 = arith.constant 0 : index
      %c0_35 = arith.constant 0 : index
      %47 = vector.load %arg8[%c0_33, %c0_34, %c0_35] : memref<1x16x128xf32, #tpu.memory_space<vmem>>, vector<1x16x128xf32>
      %48 = vector.shape_cast %47 : vector<1x16x128xf32> to vector<16x128xf32>
      %49 = vector.shape_cast %46 : vector<16x128xf32> to vector<1x16x128xf32>
      tpu.vector_store %arg8[%c0_33, %c0_34, %c0_35], %49 {strides = array<i32>} : memref<1x16x128xf32, #tpu.memory_space<vmem>>, vector<1x16x128xf32>,
    } else {
    }
    return
  }
  func.func @transform_0(%arg0: i32, %arg1: i32, %arg2: i32) -> (i32, i32, i32) {
    %c0_i32 = arith.constant 0 : i32
    %c0_i32_0 = arith.constant 0 : i32
    return %arg0, %c0_i32, %arg1 : i32, i32, i32
  }
  func.func @transform_1(%arg0: i32, %arg1: i32, %arg2: i32) -> (i32, i32, i32) {
    %c0_i32 = arith.constant 0 : i32
    %c0_i32_0 = arith.constant 0 : i32
    return %arg0, %c0_i32, %arg1 : i32, i32, i32
  }
  func.func @transform_2(%arg0: i32, %arg1: i32, %arg2: i32) -> (i32, i32, i32) {
    %c0_i32 = arith.constant 0 : i32
    %c0_i32_0 = arith.constant 0 : i32
    return %arg0, %c0_i32, %arg2 : i32, i32, i32
  }
  func.func @transform_3(%arg0: i32, %arg1: i32, %arg2: i32) -> (i32, i32, i32) {
    %c0_i32 = arith.constant 0 : i32
    %c0_i32_0 = arith.constant 0 : i32
    return %arg0, %c0_i32, %arg2 : i32, i32, i32
  }
  func.func @transform_4(%arg0: i32, %arg1: i32, %arg2: i32) -> i32 {
    %c0_i32 = arith.constant 0 : i32
    %c0_i32_0 = arith.constant 0 : i32
    return %c0_i32 : i32
  }
  func.func @transform_5(%arg0: i32, %arg1: i32, %arg2: i32) -> (i32, i32, i32) {
    %c0_i32 = arith.constant 0 : i32
    %c0_i32_0 = arith.constant 0 : i32
    return %arg0, %c0_i32, %arg1 : i32, i32, i32
  }
}

</mosaic_0001>

<bundles_post_ra>
// kernel: tpu_custom_call.1
= control target key start
LH: loop header
LB: loop body
LE: loop exit
PB: predicated region body
PF: predicated region fallthrough
CT: control target
= control target key end

     0   :  { %s1775_s0 = inlined_call_operand.hbm [shape: f32[2,16,256], index: 0, kind: input, shape index: {}]   ;;  %s1776_s1 = inlined_call_operand.hbm [shape: bf16[2,2,256], index: 1, kind: input, shape index: {}]   ;;  %s1777_s2 = inlined_call_operand.hbm [shape: bf16[2,2,256], index: 2, kind: input, shape index: {}]   ;;  %s1778_s3 = inlined_call_operand.hbm [shape: bf16[2,16,256], index: 3, kind: input, shape index: {}]   ;;  %s1779_s4 = inlined_call_operand.<no memory space> [shape: f32[1], index: 4, kind: input, shape index: {}]   ;;  %s1780_s5 = inlined_call_operand.hbm [shape: f32[2,16,256], index: 5, kind: output, shape index: {}]  }
   0x1   :  { %1797 = sst [smem:[#allocation37_spill]] %s1775_s0 }
   0x2   :  { %1798 = sst [smem:[#allocation38_spill]] %s1776_s1 }
   0x3   :  { %1799 = sst [smem:[#allocation39_spill]] %s1780_s5 }
   0x4   :  { %10 = sst [smem:[#allocation5]] %s1779_s4 }
   0x5   :  { %11 = vsyncpa [#allocation7], 0 }
   0x6   :  { %13 = vsyncpa [#allocation7 + $0x1], 0 }
   0x7   :  { %14 = vsyncpa [#allocation10], 0 }
   0x8   :  { %16 = vsyncpa [#allocation10 + $0x1], 0 }
   0x9   :  { %17 = vsyncpa [#allocation13], 0 }
   0xa   :  { %19 = vsyncpa [#allocation13 + $0x1], 0 }
   0xb   :  { %20 = vsyncpa [#allocation8], 0 }
   0xc   :  { %22 = vsyncpa [#allocation8 + $0x1], 0  ;;  %s1383_s20 = smov 0   ;;  %s1385_s21 = smov 0  }
   0xd   :  { %s1387_s22 = smov 0   ;;  %s1389_s23 = smov 0  }
   0xe   :  { %s1391_s24 = smov 0   ;;  %s1393_s25 = smov 0  }
   0xf   :  { %s1395_s4 = smov 0   ;;  %s1397_s26 = smov 0  }
  0x10   :  { %s1399_s27 = smov 0   ;;  %s1401_s28 = smov 0  }
  0x11   :  { %s1403_s29 = smov 0   ;;  %s1405_s30 = smov 0  }
  0x12   :  { %s1407_s6 = smov 0  }
  0x13 LB: > { %1800 = sst [smem:[#allocation20_spill]] %s1298_s22  ;;  %s1449_s7 = sadd.s32 4294967295, %s1338_s6   ;;  %s1338_s6 = sphi %s1407_s6, %s28_s6   ;;  %s1334_s30 = sphi %s1405_s30, %s1857_s30   ;;  %s1330_s29 = sphi %s1403_s29, %s1849_s29   ;;  %s1326_s28 = sphi %s1401_s28, %s1856_s28   ;;  %s1322_s27 = sphi %s1399_s27, %s1847_s27   ;;  %s1318_s26 = sphi %s1397_s26, %s1846_s26   ;;  %s1314_s4 = sphi %s1395_s4, %s1855_s4   ;;  %s1310_s25 = sphi %s1393_s25, %s1845_s25   ;;  %s1306_s24 = sphi %s1391_s24, %s1854_s24   ;;  %s1302_s23 = sphi %s1389_s23, %s1853_s23   ;;  %s1298_s22 = sphi %s1387_s22, %s1843_s22   ;;  %s1294_s21 = sphi %s1385_s21, %s1852_s21   ;;  %s1290_s20 = sphi %s1383_s20, %s1851_s20  }
  0x14   : > { %1801 = sst [smem:[#allocation21_spill]] %s1302_s23  ;;  %s40_s9 = sadd.s32 1, %s1326_s28 }
  0x15   : > { %1802 = sst [smem:[#allocation22_spill]] %s1310_s25  ;;  %s43_s10 = sadd.s32 1, %s1330_s29 }
  0x16   : > { %1803 = sst [smem:[#allocation23_spill]] %s1314_s4  ;;  %p41_p0 = scmp.ge.s32.totalorder %s40_s9, 2 }
  0x17   : > { %1804 = sst [smem:[#allocation24_spill]] %s1318_s26  ;;  %s47_s11 = sadd.s32 1, %s1334_s30 }
  0x18   : > { %1805 = sst [smem:[#allocation25_spill]] %s1322_s27  ;;  %p63_p1 = scmp.ne.s32.totalorder %s1310_s25, %s1306_s24 }
  0x19   : > { %1806 = sst [smem:[#allocation26_spill]] %s1330_s29  ;;  %s1859_s9 = smov (%p41_p0, %s40_s9), 0 }
  0x1a   : > { %1807 = sst [smem:[#allocation27_spill]] %s1334_s30  ;;  %s1861_s10 = smov (!%p41_p0, %s43_s10), %s1330_s29 }
  0x1b   : > { %1808 = sst [smem:[#allocation28_spill]] %s1338_s6  ;;  %p64_p2 = scmp.eq.s32.totalorder %s1338_s6, 0 }
  0x1c   : > { %1809 = sst [smem:[#allocation29_spill]] %s1859_s9  ;;  %p69_p3 = scmp.ne.s32.totalorder %s1306_s24, %s1302_s23 }
  0x1d   : > { %p45_p4 = scmp.ge.s32.totalorder %s1861_s10, 2  ;;  %p70_p5 = scmp.eq.s32.totalorder %s1449_s7, 0 }
  0x1e   : > { %p1470_p6 = por %p64_p2, %p63_p1  ;;  %s108_s14 = ssub.s32 %s1326_s28, %s1859_s9 }
  0x1f   : > { %s1863_s10 = smov (%p45_p4, %s1861_s10), 0  ;;  %s1865_s11 = smov (!%p45_p4, %s47_s11), %s1334_s30 }
  0x20   : > { %1811 = sst [smem:[#allocation30_spill]] %s1863_s10  ;;  %s52_s15 = ssub.s32 %s1330_s29, %s1863_s10 }
  0x21   : > { %p1486_p7 = por %p70_p5, %p69_p3  ;;  %p49_p8 = scmp.ge.s32.totalorder %s1865_s11, 2 }
  0x22   : > { %s112_s17 = sadd.s32 1, %s1298_s22  ;;  %p119_p9 = scmp.ne.s32.totalorder %s1298_s22, %s1294_s21 }
  0x23   : > { %p125_p10 = scmp.ne.s32.totalorder %s1294_s21, %s1290_s20  ;;  %s1867_s11 = smov (%p49_p8, %s1865_s11), 0 }
  0x24   : > { %1813 = sst [smem:[#allocation31_spill]] %s1867_s11  ;;  %p1499_p11 = por %p119_p9, %p64_p2 }
  0x25   : > { %p1505_p12 = por %p125_p10, %p70_p5  ;;  %s51_s12 = ssub.s32 %s1334_s30, %s1867_s11 }
  0x26   : > { %p200_p13 = scmp.eq.s32.totalorder %s1449_s7, 7  ;;  %s53_s20 = sor.u32 %s52_s15, %s51_s12 }
  0x27   : > { %s1815_s19 = scalar_select %p1505_p12, 1, 0 }
  0x28   : > { %s109_s8 = sor.u32 %s108_s14, %s51_s12  ;;  %p54_p0 = scmp.eq.s32.totalorder %s53_s20, 0 }
  0x29   : > { %1816 = sst [smem:[#allocation32_spill]] %s1815_s19  ;;  %p110_p4 = scmp.eq.s32.totalorder %s109_s8, 0 }
  0x2a   : > { %p1515_p2 = por %p200_p13, %p63_p1  ;;  %s1819_s9 = sadd.s32 4294967294, %s1338_s6  }
  0x2b   : > { %p206_p8 = scmp.eq.s32.totalorder %s1819_s9, 7  ;;  %s1820_s5 = sadd.s32 1, %s1310_s25 }
  0x2c   : > { %s1817_s10 = scalar_select %p1515_p2, 1, 0 }
  0x2d   : > { %s1524_s26 = scalar_select %p54_p0, %s1310_s25, %s1820_s5  }
  0x2e   : > { %1818 = sst [smem:[#allocation33_spill]] %s1817_s10  ;;  %p1532_p5 = por %p206_p8, %p69_p3 }
  0x2f   : > { %1821 = sst [smem:[#allocation34_spill]] %s1524_s26  ;;  %p915_p9 = scmp.lt.s32.totalorder %s1338_s6, 8 }
  0x30   : > { %s1527_s27 = scalar_select %p110_p4, %s1298_s22, %s112_s17  }
  0x31   : > { %s1823_s12 = scalar_select %p1532_p5, 1, 0 }
  0x32   : > { %1822 = sst [smem:[#allocation35_spill]] %s1527_s27  ;;  %s1538_s8 = sand.u32 1, %s1310_s25  }
  0x33   : > { %1824 = sst [smem:[#allocation36_spill]] %s1823_s12  ;;  %s854_s14 = sshll.u32 %s1538_s8, 4 }
  0x34   : > { %p1545_p1 = pnand %p915_p9, %p1470_p6  ;;  %s233_s9 = scalar_lea.vmem [#allocation6], %s854_s14 }
  0x35   : > { %s242_s15 = sshll.u32 %s233_s9, 4  ;;  %s252_s17 = sand.u32 1, %s1338_s6   ;;  %s1550_s15 = int_to_ptr.vmem [resolvable:$true] %s242_s15 }
  0x36   : > { %s857_s20 = sshll.u32 %s1334_s30, 1  ;;  %s255_s11 = scalar_lea.vmem [#allocation9], %s1538_s8 }
  0x37   : > { %s264_s26 = sshll.u32 %s255_s11, 4  ;;  %s259_s25 = sadd.s32 %s1330_s29, %s857_s20  ;;  %s265_s26 = int_to_ptr.vmem [resolvable:$true] %s264_s26 }
  0x38   : > { %s1826_s1 = sld [smem:[#allocation38_spill]]  ;;  %s278_s23 = sadd.s32 %s1326_s28, %s857_s20 }
  0x39   : > { %p1563_p3 = pnand %p915_p9, %p1499_p11  ;;  %p862_p6 = scmp.ge.s32.totalorder %s1338_s6, 1 }
  0x3a   : > { %s253_s11 = scalar_lea.sflag [#allocation10], %s252_s17  ;;  %p311_p10 = scmp.lt.s32.totalorder %s1338_s6, 9 }
  0x3b   : > { %s1829_s0 = sld [smem:[#allocation37_spill]]  ;;  %s1581_s4 = sand.u32 1, %s1298_s22  }
  0x3c   : > { %p1571_p13 = pnand %p862_p6, %p311_p10  ;;  %s1340_s17 = smov 256  }
  0x3d   : > { %s1342_s6 = smov 8   ;;  %s274_s20 = scalar_lea.vmem [#allocation11], %s1581_s4 }
  0x3e   : > { %s260_s12 = scalar_lea.hbm %s1826_s1, %s259_s25  ;;  %s855_s25 = sshll.u32 %s1334_s30, 2 }
  0x3f   : > { %s262_s14 = sshll.u32 %s260_s12, 4  ;;  %s237_s12 = sadd.s32 %s1330_s29, %s855_s25  ;;  %s263_s14 = int_to_ptr.hbm [resolvable:$true] %s262_s14 }
  0x40   : > { %904 = dma.hbm_to_vmem [thread:$0]  (!%p1545_p1), %s263_s14, 16, %s265_s26, %s253_s11  }
  0x41   : > { %s856_s18 = sshll.u32 %s237_s12, 3  ;;  %s230_s26 = scalar_lea.sflag [#allocation7], %s1538_s8 }
  0x42   : > { %s239_s1 = scalar_lea.hbm %s1829_s0, %s856_s18  ;;  %s1341_s14 = smov 128  }
  0x43   : > { %s240_s10 = sshll.u32 %s239_s1, 4  ;;  %s279_s29 = scalar_lea.hbm %s1777_s2, %s278_s23  ;;  %s241_s10 = int_to_ptr.hbm [resolvable:$true] %s240_s10 }
  0x44   : > { %901 = dma.hbm_to_vmem [thread:$0]  (!%p1545_p1), %s241_s10, 256, %s1550_s15, %s230_s26, %s1340_s17, %s1341_s14, %s1342_s6  }
  0x45   : > { %s283_s18 = sshll.u32 %s274_s20, 4  ;;  %s281_s1 = sshll.u32 %s279_s29, 4  ;;  %s284_s18 = int_to_ptr.vmem [resolvable:$true] %s283_s18  ;;  %s282_s1 = int_to_ptr.hbm [resolvable:$true] %s281_s1 }
  0x46   : > { %907 = dma.hbm_to_vmem [thread:$0]  (!%p1563_p3), %s282_s1, 16, %s284_s18, %s253_s11  }
  0x47   : > { %s859_s13 = sshll.u32 %s1581_s4, 3  ;;  %s298_s8 = sadd.s32 %s1326_s28, %s855_s25 }
  0x48   : > { %s861_s0 = sshll.u32 %s298_s8, 2  ;;  %s294_s22 = scalar_lea.vmem [#allocation12], %s859_s13 }
  0x49   : > { %s303_s19 = sshll.u32 %s294_s22, 4  ;;  %s300_s10 = scalar_lea.hbm %s1778_s3, %s861_s0  ;;  %s304_s19 = int_to_ptr.vmem [resolvable:$true] %s303_s19 }
  0x4a   : > { %s301_s23 = sshll.u32 %s300_s10, 4  ;;  %s291_s30 = scalar_lea.sflag [#allocation13], %s1581_s4  ;;  %s302_s23 = int_to_ptr.hbm [resolvable:$true] %s301_s23 }
  0x4b   : > { %s1343_s15 = smov 64   ;;  %s1344_s29 = smov 4  }
  0x4c   : > { %910 = dma.hbm_to_vmem [thread:$0]  (!%p1563_p3), %s302_s23, 128, %s304_s19, %s291_s30, %s1341_s14, %s1343_s15, %s1344_s29  }
  0x4d   : > { %315 = sbr.rel (%p1571_p13) target bundleno = 802 (0x322), region = 40  ;;  %s1604_s11 = sand.u32 (!%p1571_p13), 1, %s1306_s24  }
  0x4e   : > { %s863_s22 = sshll.u32 (!%p1571_p13), %s1604_s11, 4  ;;  %s318_s25 = scalar_lea.sflag (!%p1571_p13), [#allocation7], %s1604_s11 }
  0x4f   : > { %s1608_s0 = scalar_lea.vmem (!%p1571_p13), [#allocation6], %s863_s22 }
  0x52   : > { %1269 = dma.done.wait (%p1486_p7), %s318_s25, 256  }
  0x53   : > { %1271 = vsyncadd (%p1486_p7), %s318_s25, 4294967040  ;;  %s327_s4 = sand.u32 1, %s1449_s7   ;;  %s330_s9 = scalar_lea.vmem [#allocation9], %s1604_s11 }
  0x54   : > { %s328_s19 = scalar_lea.sflag [#allocation10], %s327_s4 }
  0x55   : > { %1273 = dma.done.wait (%p1486_p7), %s328_s19, 16  }
  0x56   : > { %1275 = vsyncadd (%p1486_p7), %s328_s19, 4294967280  ;;  %s338_s26 = sand.u32 1, %s1294_s21  }
  0x57   : > { %s339_s17 = scalar_lea.vmem [#allocation11], %s338_s26 }
  0x58   : > { %1277 = dma.done.wait (%p1505_p12), %s328_s19, 16  }
  0x59   : > { %1279 = vsyncadd (%p1505_p12), %s328_s19, 4294967280  ;;  %s864_s14 = sshll.u32 %s338_s26, 3  ;;  %s346_s12 = scalar_lea.sflag [#allocation13], %s338_s26 }
  0x5a   : > { %s1625_s7 = scalar_lea.vmem [#allocation12], %s864_s14 }
  0x5b   : > { %1281 = dma.done.wait (%p1505_p12), %s346_s12, 128  }
  0x5c   : > { %1283 = vsyncadd (%p1505_p12), %s346_s12, 4294967168  ;;  %s1631_s16 = scalar_lea.vmem [#allocation14], %s863_s22  ;;  %s1831_s20 = sld [smem:[#allocation23_spill]] }
  0x62   : > { %p866_p7 = scmp.ne.s32.totalorder %s1831_s20, 0 }
  0x64   : > { %394 = sbr.rel (%p866_p7) target bundleno = 110 (0x6e), region = 60 }
  0x69   : > { %v1345_v0 = vmov -inf   ;;  %v1346_v1 = vmov 0.0  }
  0x6a   : > { %395 = vst [vmem:[#allocation3] sm:$0x1] %v1345_v0 }
  0x6b   : > { %396 = vst [vmem:[#allocation4] sm:$0x1] %v1346_v1 }
  0x6c   : > { %397 = vst [vmem:[#allocation2] sm:$0xff] %v1346_v1 }
  0x6d   : > { %398 = vst [vmem:[#allocation2 + $0x8] sm:$0xff] %v1346_v1 }
  0x6e PF: > { %v400_v2 = vld [vmem:[%s339_s17] sm:$0x1]  ;;  %vm444_vm0 = vcmask 1040384   ;;  %vm419_vm1 = vcmask 15360   ;;  %s1832_s18 = sld [smem:[#allocation23_spill]] }
  0x6f   : > { %v399_v3 = vld [vmem:[%s330_s9] sm:$0x1]  ;;  %403 = vxpose.xlu0.c.b16.start.end [1/1] (short) %v400_v2, 128 }
  0x70   : > { %v446_v4 = vsel %vm444_vm0, %v399_v3, 0 }
  0x71   : > { %455 = vmatpush.bf16.msra.mxu0 %v446_v4  ;;  %886 = vmatpush.bf16.msra.mxu2 %v446_v4  ;;  %v1669_v49 = vld [vmem:[#allocation3] sm:$0x1] }
  0x72   : > { %887 = vmatpush.bf16.msra.mxu3 %v446_v4 }
  0x74   : > { %p879_p11 = scmp.ne.s32.totalorder %s1832_s18, 1 }
  0x75   : > { %s658_s1 = sld [smem:[#allocation5]] (!%p879_p11) }
 0x11b   : > { %v411_v5 = vpop.trf.xlu0 }
 0x11c   : > { %867 = vmatmul.msk.bf16.vlgmr.msra.gmra.mxu0 %vm419_vm1, %v411_v5 }
 0x12b   : > { %v412_v6 = vpop.trf.xlu0 }
 0x12c   : > { %868 = vmatmul.msk.bf16.gmra.mxu0 %vm419_vm1, %v412_v6 }
 0x13b   : > { %v413_v7 = vpop.trf.xlu0 }
 0x13c   : > { %869 = vmatmul.msk.bf16.gmra.mxu0 %vm419_vm1, %v413_v7 }
 0x14b   : > { %v414_v8 = vpop.trf.xlu0 }
 0x14c   : > { %870 = vmatmul.msk.bf16.vlgmr.msra.gmra.mxu2 %vm419_vm1, %v414_v8 }
 0x15b   : > { %v415_v9 = vpop.trf.xlu0 }
 0x15c   : > { %871 = vmatmul.msk.bf16.gmra.mxu2 %vm419_vm1, %v415_v9 }
 0x16b   : > { %v416_v10 = vpop.trf.xlu0 }
 0x16c   : > { %872 = vmatmul.msk.bf16.gmra.mxu2 %vm419_vm1, %v416_v10 }
 0x17b   : > { %v417_v11 = vpop.trf.xlu0 }
 0x17c   : > { %873 = vmatmul.msk.bf16.vlgmr.msra.gmra.mxu3 %vm419_vm1, %v417_v11 }
 0x18b   : > { %v418_v12 = vpop.trf.xlu0 }
 0x18c   : > { %874 = vmatmul.msk.bf16.gmra.mxu3 %vm419_vm1, %v418_v12 }
 0x199   : > { %v457_v13 = vpop.f32.mrf.mxu0 }
 0x1a1   : > { %v459_v15 = vpop.f32.mrf.mxu0 }
 0x1a9   : > { %v462_v17 = vpop.f32.mrf.mxu0 }
 0x1b1   : > { %v464_v19 = vpop.f32.mrf.mxu0 }
 0x1b9   : > { %v467_v22 = vpop.f32.mrf.mxu0 }
 0x1ba   : > { %v498_v29 = vmax.f32 %v457_v13, %v467_v22 }
 0x1c1   : > { %v469_v25 = vpop.f32.mrf.mxu0 }
 0x1c2   : > { %v499_v27 = vmax.f32 %v459_v15, %v469_v25 }
 0x1cf   : > { %v1642_v14 = vpop.f32.mrf.mxu2 }
 0x1d0   : > { %v500_v30 = vmax.f32 %v462_v17, %v1642_v14 }
 0x1d7   : > { %v1644_v16 = vpop.f32.mrf.mxu2 }
 0x1d8   : > { %v501_v31 = vmax.f32 %v464_v19, %v1644_v16 }
 0x1df   : > { %v1646_v18 = vpop.f32.mrf.mxu2 }
 0x1e0   : > { %v502_v33 = vmax.f32 %v498_v29, %v1646_v18 }
 0x1e7   : > { %v1648_v20 = vpop.f32.mrf.mxu2 }
 0x1e8   : > { %v503_v32 = vmax.f32 %v499_v27, %v1648_v20 }
 0x1ef   : > { %v1654_v24 = vpop.f32.mrf.mxu2 }
 0x1f0   : > { %v504_v34 = vmax.f32 %v500_v30, %v1654_v24 }
 0x1f7   : > { %v1658_v28 = vpop.f32.mrf.mxu2 }
 0x1f8   : > { %v505_v35 = vmax.f32 %v501_v31, %v1658_v28 }
 0x1ff   : > { %v1650_v21 = vpop.f32.mrf.mxu3 }
 0x200   : > { %v506_v38 = vmax.f32 %v502_v33, %v1650_v21 }
 0x207   : > { %v1652_v23 = vpop.f32.mrf.mxu3 }
 0x208   : > { %v507_v36 = vmax.f32 %v503_v32, %v1652_v23 }
 0x20a   : > { %v510_v41 = vmax.f32 %v506_v38, %v507_v36 }
 0x20f   : > { %v1656_v26 = vpop.f32.mrf.mxu3 }
 0x210   : > { %v508_v39 = vmax.f32 %v504_v34, %v1656_v26 }
 0x217   : > { %v494_v37 = vpop.f32.mrf.mxu3 }
 0x218   : > { %v509_v40 = vmax.f32 %v505_v35, %v494_v37 }
 0x21a   : > { %v511_v42 = vmax.f32 %v508_v39, %v509_v40 }
 0x21c   : > { %v512_v43 = vmax.f32 %v510_v41, %v511_v42 }
 0x21e   : > { %v513_v44 = vrot.slane %v512_v43, 4 }
 0x220   : > { %v514_v45 = vmax.f32 %v512_v43, %v513_v44 }
 0x222   : > { %v515_v46 = vrot.slane %v514_v45, 2 }
 0x224   : > { %v516_v47 = vmax.f32 %v514_v45, %v515_v46 }
 0x226   : > { %v517_v48 = vrot.slane %v516_v47, 1 }
 0x228   : > { %v518_v50 = vmax.f32 %v516_v47, %v517_v48 }
 0x22a   : > { %v1672_v51 = vmax.f32 %v1669_v49, %v518_v50 }
 0x22c   : > { %v524_v52 = vperm.slane %v1672_v51, 0  ;;  %638 = vst [vmem:[#allocation3] sm:$0x1] %v1672_v51 }
 0x22e   : > { %v526_v53 = vsub.f32 %v457_v13, %v524_v52  ;;  %v527_v54 = vsub.f32 %v459_v15, %v524_v52  ;;  %v528_v55 = vsub.f32 %v462_v17, %v524_v52  ;;  %v529_v56 = vsub.f32 %v464_v19, %v524_v52 }
 0x22f   : > { %v530_v59 = vsub.f32 %v467_v22, %v524_v52  ;;  %v531_v61 = vsub.f32 %v469_v25, %v524_v52  ;;  %v541_v63 = vsub.f32 %v494_v37, %v524_v52  ;;  %v532_v0 = vsub.f32 %v1642_v14, %v524_v52 }
 0x230   : > { %v542_v57 = vmul.f32 1.442695, %v526_v53  ;;  %v544_v58 = vmul.f32 1.442695, %v527_v54  ;;  %v546_v60 = vmul.f32 1.442695, %v528_v55  ;;  %v533_v2 = vsub.f32 %v1644_v16, %v524_v52 }
 0x231   : > { %v548_v62 = vmul.f32 1.442695, %v529_v56  ;;  %v550_v1 = vmul.f32 1.442695, %v530_v59  ;;  %v534_v3 = vsub.f32 %v1646_v18, %v524_v52  ;;  %v552_v4 = vmul.f32 1.442695, %v531_v61 }
 0x232   : > { %1032 = vpow2.f32 %v542_v57  ;;  %v572_v6 = vmul.f32 1.442695, %v541_v63  ;;  %v540_v7 = vsub.f32 %v1656_v26, %v524_v52  ;;  %v538_v9 = vsub.f32 %v1650_v21, %v524_v52 }
 0x233   : > { %1034 = vpow2.f32 %v544_v58  ;;  %v554_v10 = vmul.f32 1.442695, %v532_v0  ;;  %v539_v11 = vsub.f32 %v1652_v23, %v524_v52  ;;  %v556_v12 = vmul.f32 1.442695, %v533_v2 }
 0x234   : > { %1036 = vpow2.f32 %v546_v60  ;;  %v535_v15 = vsub.f32 %v1648_v20, %v524_v52  ;;  %v558_v16 = vmul.f32 1.442695, %v534_v3  ;;  %v570_v17 = vmul.f32 1.442695, %v540_v7 }
 0x235   : > { %1038 = vpow2.f32 %v548_v62  ;;  %v536_v21 = vsub.f32 %v1654_v24, %v524_v52  ;;  %v566_v22 = vmul.f32 1.442695, %v538_v9  ;;  %v537_v23 = vsub.f32 %v1658_v28, %v524_v52  ;;  %v885_v9 = vld [vmem:[%s1625_s7] sm:$0xff] }
 0x236   : > { %1040 = vpow2.f32 %v550_v1  ;;  %v568_v25 = vmul.f32 1.442695, %v539_v11  ;;  %v560_v20 = vmul.f32 1.442695, %v535_v15  ;;  %v520_v54 = vsub.f32 %v1669_v49, %v1672_v51  ;;  %v603_v51 = vld [vmem:[#allocation4] sm:$0x1] }
 0x237   : > { %1042 = vpow2.f32 %v552_v4  ;;  %v562_v31 = vmul.f32 1.442695, %v536_v21  ;;  %v564_v33 = vmul.f32 1.442695, %v537_v23 }
 0x238   : > { %v1679_v5 = vpop.eup %1032  ;;  %1044 = vpow2.f32 %v572_v6  ;;  %v521_v58 = vmul.f32 1.442695, %v520_v54 }
 0x239   : > { %v1682_v8 = vpop.eup %1034  ;;  %1046 = vpow2.f32 %v554_v10 }
 0x23a   : > { %v582_v13 = vadd.f32 %v1682_v8, %v1679_v5  ;;  %v1688_v14 = vpop.eup %1036  ;;  %1048 = vpow2.f32 %v556_v12  ;;  %v574_v7 = vpack.c.bf16 %v1682_v8, %v1679_v5  ;;  %v607_v12 = vld [vmem:[#allocation2] sm:$0xff] }
 0x23b   : > { %v1692_v19 = vpop.eup %1038  ;;  %1050 = vpow2.f32 %v558_v16 }
 0x23c   : > { %v583_v18 = vadd.f32 %v1688_v14, %v582_v13  ;;  %v1041_v27 = vpop.eup %1040  ;;  %1052 = vpow2.f32 %v570_v17  ;;  %v575_v49 = vpack.c.bf16 %v1692_v19, %v1688_v14  ;;  %v608_v14 = vld [vmem:[#allocation2 + $0x8] sm:$0xff] }
 0x23d   : > { %v1043_v30 = vpop.eup %1042  ;;  %1054 = vpow2.f32 %v566_v22 }
 0x23e   : > { %v584_v26 = vadd.f32 %v1692_v19, %v583_v18  ;;  %v1045_v32 = vpop.eup %1044  ;;  %1056 = vpow2.f32 %v568_v25  ;;  %v576_v63 = vpack.c.bf16 %v1043_v30, %v1041_v27 }
 0x23f   : > { %v1047_v34 = vpop.eup %1046  ;;  %1058 = vpow2.f32 %v560_v20 }
 0x240   : > { %v585_v29 = vadd.f32 %v1041_v27, %v584_v26  ;;  %v1049_v35 = vpop.eup %1048  ;;  %1060 = vpow2.f32 %v562_v31 }
 0x241   : > { %v1051_v36 = vpop.eup %1050  ;;  %1062 = vpow2.f32 %v564_v33  ;;  %v577_v60 = vpack.c.bf16 %v1049_v35, %v1047_v34 }
 0x242   : > { %v586_v24 = vadd.f32 %v1043_v30, %v585_v29  ;;  %v1053_v37 = vpop.eup %1052  ;;  %1064 = vpow2.f32 %v521_v58 }
 0x243   : > { %v1055_v39 = vpop.eup %1054  ;;  %v581_v40 = vpack.c.bf16 %v1045_v32, %v1053_v37 }
 0x244   : > { %v587_v28 = vadd.f32 %v1047_v34, %v586_v24  ;;  %v1057_v41 = vpop.eup %1056 }
 0x245   : > { %v1059_v43 = vpop.eup %1058  ;;  %620 = vmatpush.bf16.msra.mxu1 %v581_v40  ;;  %v580_v46 = vpack.c.bf16 %v1057_v41, %v1055_v39 }
 0x246   : > { %v588_v38 = vadd.f32 %v1049_v35, %v587_v28  ;;  %v1061_v45 = vpop.eup %1060  ;;  %v578_v56 = vpack.c.bf16 %v1059_v43, %v1051_v36 }
 0x247   : > { %v1063_v47 = vpop.eup %1062 }
 0x248   : > { %v589_v42 = vadd.f32 %v1051_v36, %v588_v38  ;;  %v579_v52 = vpack.c.bf16 %v1063_v47, %v1061_v45  ;;  %v1065_v2 = vpop.eup %1064 }
 0x249   : > { %621 = vmatpush.bf16.msra.mxu1 %v580_v46  ;;  %v604_v6 = vmul.f32 %v1065_v2, %v603_v51  ;;  %v610_v11 = vperm.slane %v1065_v2, 0 }
 0x24a   : > { %v590_v44 = vadd.f32 %v1059_v43, %v589_v42 }
 0x24b   : > { %v612_v13 = vmul.f32 %v610_v11, %v607_v12  ;;  %v613_v17 = vmul.f32 %v610_v11, %v608_v14 }
 0x24c   : > { %v591_v48 = vadd.f32 %v1061_v45, %v590_v44 }
 0x24d   : > { %622 = vmatpush.bf16.msra.mxu1 %v579_v52 }
 0x24e   : > { %v592_v50 = vadd.f32 %v1063_v47, %v591_v48 }
 0x250   : > { %v593_v53 = vadd.f32 %v1055_v39, %v592_v50 }
 0x251   : > { %623 = vmatpush.bf16.msra.mxu1 %v578_v56 }
 0x252   : > { %v594_v55 = vadd.f32 %v1057_v41, %v593_v53 }
 0x254   : > { %v595_v57 = vadd.f32 %v1053_v37, %v594_v55 }
 0x255   : > { %624 = vmatpush.bf16.msra.mxu1 %v577_v60 }
 0x256   : > { %v596_v59 = vadd.f32 %v1045_v32, %v595_v57 }
 0x258   : > { %v597_v61 = vrot.slane %v596_v59, 4 }
 0x259   : > { %625 = vmatpush.bf16.msra.mxu1 %v576_v63 }
 0x25a   : > { %v598_v62 = vadd.f32 %v597_v61, %v596_v59 }
 0x25c   : > { %v599_v0 = vrot.slane %v598_v62, 2 }
 0x25d   : > { %626 = vmatpush.bf16.msra.mxu1 %v575_v49 }
 0x25e   : > { %v600_v1 = vadd.f32 %v599_v0, %v598_v62 }
 0x260   : > { %v601_v3 = vrot.slane %v600_v1, 1 }
 0x261   : > { %627 = vmatpush.bf16.msra.mxu1 %v574_v7 }
 0x262   : > { %v602_v4 = vadd.f32 %v601_v3, %v600_v1 }
 0x264   : > { %v605_v10 = vadd.f32 %v604_v6, %v602_v4  ;;  %628 = vmatmul.bf16.vlgmr.msra.gmra.mxu1 %v885_v9 }
 0x266   : > { %606 = vst [vmem:[#allocation4] sm:$0x1] %v605_v10 }
 0x2e1   : > { %v629_v15 = vpop.f32.mrf.mxu1 }
 0x2e2   : > { %v634_v16 = vadd.f32 %v629_v15, %v612_v13 }
 0x2e4   : > { %636 = vst [vmem:[#allocation2] sm:$0xff] %v634_v16 }
 0x2e8   : > { %642 = sbr.rel (%p879_p11) target bundleno = 777 (0x309), region = 64 }
 0x2e9   : > { %v631_v18 = vpop.f32.mrf.mxu1 }
 0x2ea   : > { %v635_v19 = vadd.f32 %v631_v18, %v613_v17 }
 0x2ec   : > { %637 = vst [vmem:[#allocation2 + $0x8] sm:$0xff] %v635_v19 }
 0x2ed   : > { %v643_v5 = vld [vmem:[#allocation4] sm:$0x1]  ;;  %v659_v31 = vld [vmem:[#allocation2] sm:$0xff]  ;;  %v666_v24 = vstv %s658_s1 }
 0x2ee   : > { %1066 = vrcp.f32 %v643_v5  ;;  %v655_v22 = vand.u32 2147483648, %v643_v5  ;;  %vm649_vm2 = vweird.f32 %v643_v5  ;;  %v653_v25 = vand.u32 2147483647, %v643_v5  ;;  %v669_v28 = vld [vmem:[%s1608_s0] sm:$0xff]  ;;  %v670_v36 = vld [vmem:[%s1608_s0 + $0x8] sm:$0xff] }
 0x2f0   : > { %v656_v27 = vor.u32 1.1754944e-38, %v655_v22  ;;  %vm654_vm5 = vcmp.eq.f32.partialorder %v653_v25, 8.507059e+37 }
 0x2f3   : > { %v660_v32 = vld [vmem:[#allocation2 + $0x8] sm:$0xff] }
 0x2f4   : > { %v1067_v8 = vpop.eup %1066 }
 0x2f5   : > { %v645_v21 = vmul.f32 %v1067_v8, %v643_v5  ;;  %vm650_vm3 = vweird.f32 %v1067_v8 }
 0x2f6   : > { %vm651_vm4 = vmor %vm649_vm2, %vm650_vm3 }
 0x2f7   : > { %v646_v23 = vsub.f32 1.0, %v645_v21 }
 0x2f9   : > { %v647_v26 = vmul.f32 %v1067_v8, %v646_v23 }
 0x2fb   : > { %v648_v20 = vadd.f32 %v1067_v8, %v647_v26 }
 0x2fd   : > { %v652_v29 = vsel %vm651_vm4, %v1067_v8, %v648_v20 }
 0x2fe   : > { %v657_v30 = vsel %vm654_vm5, %v656_v27, %v652_v29 }
 0x2ff   : > { %v662_v33 = vperm.slane %v657_v30, 0 }
 0x301   : > { %v664_v34 = vmul.f32 %v662_v33, %v659_v31  ;;  %v665_v35 = vmul.f32 %v662_v33, %v660_v32 }
 0x303   : > { %v667_v37 = vmul.f32 %v666_v24, %v664_v34  ;;  %v668_v38 = vmul.f32 %v666_v24, %v665_v35 }
 0x305   : > { %v671_v39 = vadd.f32 %v669_v28, %v667_v37  ;;  %v672_v40 = vadd.f32 %v670_v36, %v668_v38 }
 0x307   : > { %673 = vst [vmem:[%s1631_s16] sm:$0xff] %v671_v39 }
 0x308   : > { %674 = vst [vmem:[%s1631_s16 + $0x8] sm:$0xff] %v672_v40 }
 0x309 PF: > { %s1833_s13 = sld [smem:[#allocation25_spill]]  ;;  %s689_s23 = sshll.u32 %s1631_s16, 4  ;;  %s690_s23 = int_to_ptr.vmem [resolvable:$true] %s689_s23 }
 0x30a   : > { %s1834_s8 = sld [smem:[#allocation24_spill]]  ;;  %s676_s19 = scalar_lea.sflag [#allocation8], %s1604_s11 }
 0x30b   : > { %s1836_s22 = sld [smem:[#allocation39_spill]] }
 0x30f   : > { %s881_s6 = sshll.u32 %s1833_s13, 2 }
 0x310   : > { %s686_s10 = sadd.s32 %s1834_s8, %s881_s6 }
 0x311   : > { %s882_s30 = sshll.u32 %s686_s10, 3  ;;  %s1837_s0 = smov %s1836_s22 }
 0x312   : > { %s688_s25 = scalar_lea.hbm %s1836_s22, %s882_s30  ;;  %s1208_s14 = scalar_lea.hbm %s1837_s0, 64 }
 0x313   : > { %s691_s4 = sshll.u32 %s688_s25, 4  ;;  %s692_s4 = int_to_ptr.hbm [resolvable:$true] %s691_s4 }
 0x314   : > { %s1202_s9 = sshra.s32 %s692_s4, 4  ;;  %s1203_s9 = int_to_ptr.hbm [resolvable:$true] %s1202_s9 }
 0x315   : > { %s1204_s27 = scalar_lea.hbm %s1203_s9, 16  ;;  %p1209_p8 = scmp.lt.s32.totalorder %s1203_s9, %s1837_s0 }
 0x316   : > { %p1205_p12 = scmp.ne.s32.totalorder %s1203_s9, %s1204_s27  ;;  %p1210_p9 = scmp.lt.s32.totalorder %s1208_s14, %s1204_s27 }
 0x318   : > { %p1206_p0 = pnand %p1205_p12, %p1515_p2  ;;  %p1211_p1 = por %p1210_p9, %p1209_p8 }
 0x31a   : > { %p1207_p4 = pneg %p1206_p0 }
 0x31c   : > { %p1212_p3 = pnand %p1211_p1, %p1207_p4 }
 0x31e   : > { %1215 = shalt.err (!%p1212_p3)
}
 0x31f   : > { %s1347_s11 = smov 128   ;;  %s1348_s16 = smov 256  }
 0x320   : > { %s1349_s20 = smov 8  }
 0x321   : > { %896 = dma.vmem_to_hbm [thread:$0]  (%p1515_p2), %s690_s23, 256, %s692_s4, %s676_s19, %s1347_s11, %s1348_s16, %s1349_s20  }
 0x322 PF: > { %s1838_s18 = sld [smem:[#allocation28_spill]] }
 0x323   : > { %s1839_s1 = sld [smem:[#allocation21_spill]] }
 0x328   : > { %p916_p6 = scmp.ge.s32.totalorder %s1838_s18, 2 }
 0x329   : > { %s706_s8 = sand.u32 1, %s1839_s1  }
 0x32a   : > { %p912_p10 = pnand %p916_p6, %p1532_p5  ;;  %s707_s6 = scalar_lea.sflag [#allocation8], %s706_s8 }
 0x32c   : > { %p913_p13 = pneg %p912_p10 }
 0x32e   : > { %1285 = dma.done.wait (%p913_p13), %s707_s6, 256  }
 0x32f   : > { %1287 = vsyncadd (%p913_p13), %s707_s6, 4294967040  ;;  %s28_s6 = sadd.s32 1, %s1838_s18   ;;  %s1842_s5 = sld [smem:[#allocation20_spill]] }
 0x330   : > { %p1731_p7 = scmp.ge.s32.totalorder %s28_s6, 10   ;;  %s1843_s22 = sld [smem:[#allocation35_spill]] }
 0x331   : > { %s1844_s30 = sld [smem:[#allocation22_spill]]  ;;  %s1851_s20 = smov %s1294_s21 }
 0x332   : > { %s1845_s25 = sld [smem:[#allocation34_spill]]  ;;  %s1853_s23 = smov %s1306_s24 }
 0x333   : > { %s1846_s26 = sld [smem:[#allocation26_spill]]  ;;  %s1855_s4 = smov %s1326_s28 }
 0x334   : > { %s1847_s27 = sld [smem:[#allocation27_spill]] }
 0x335   : > { %s1848_s15 = sld [smem:[#allocation29_spill]]  ;;  %s1852_s21 = smov %s1842_s5 }
 0x336   : > { %s1849_s29 = sld [smem:[#allocation30_spill]] }
 0x337   : > { %s1850_s19 = sld [smem:[#allocation31_spill]]  ;;  %s1854_s24 = smov %s1844_s30 }
 0x339   :  { %27 = sbr.rel (!%p1731_p7) target bundleno = 19 (0x13), region = 130 }
 0x33b   : > { %s1856_s28 = smov %s1848_s15 }
 0x33d   : > { %s1857_s30 = smov %s1850_s19 }
 0x33e   :  { %713 = vsyncpa [#allocation7], 1 }
 0x33f   :  { %715 = vsyncpa [#allocation7 + $0x1], 1 }
 0x340   :  { %716 = vsyncpa [#allocation10], 1 }
 0x341   :  { %718 = vsyncpa [#allocation10 + $0x1], 1 }
 0x342   :  { %719 = vsyncpa [#allocation13], 1 }
 0x343   :  { %721 = vsyncpa [#allocation13 + $0x1], 1 }
 0x344   :  { %722 = vsyncpa [#allocation8], 1 }
 0x345   :  { %724 = vsyncpa [#allocation8 + $0x1], 1 }

</bundles_post_ra>
